<compile_context>
chip_gen: v6e
topology: v6e:2x2x1
jax: 0.10.0
libtpu: 0.0.40
codegen_flags: <defaults>
</compile_context>

<pallas_src>
import jax
import jax.numpy as jnp
from jax import lax
from jax.experimental import pallas as pl
from jax.experimental.pallas import tpu as pltpu

KH = KW = 4
STRIDE = 2
BN_EPS = 1e-5
NEG_SLOPE = 0.2


def _round_up(x, m):
    return (x + m - 1) // m * m


def _largest_divisor_leq(n, limit):
    limit = max(1, min(n, limit))
    for d in range(limit, 0, -1):
        if n % d == 0:
            return d
    return 1


# ----------------------------------------------------------------------------
# Pass 1: implicit-GEMM conv (bf16 MXU, f32 accum) + per-channel sum / sum-sq.
# ----------------------------------------------------------------------------
def _conv_stats_kernel(yr_ref, w_ref, conv_ref, stats_ref):
    # yr_ref:    (TILE_R, Wh, C8)  bf16  row-pair space-to-depth input tile
    # w_ref:     (2, C8, Cp)       bf16  [rx=0; rx=1] weight matrices
    # conv_ref:  (TILE_R, Wh, Cp)  bf16  conv output tile
    # stats_ref: (8, Cp)           f32   rows 0/1 = per-core sum / sum-of-squares
    t = pl.program_id(1)
    tile_r, wh, c8 = yr_ref.shape
    cp = conv_ref.shape[-1]
    tm = tile_r * wh

    @pl.when(t == 0)
    def _():
        stats_ref[...] = jnp.zeros_like(stats_ref)

    lhs = yr_ref[...].reshape(tm, c8)                               # (TM, C8) bf16
    p0 = jnp.dot(lhs, w_ref[0], preferred_element_type=jnp.float32)
    p1 = jnp.dot(lhs, w_ref[1], preferred_element_type=jnp.float32)
    # kx-shift: output column c needs input column c+1 for the rx=1 term, i.e.
    # the next flat row of p1.  The row shifted in across an image-row boundary
    # only lands in the (masked-out) last output column of each row.
    p1 = jnp.concatenate([p1[1:], jnp.zeros((1, cp), jnp.float32)], axis=0)
    conv = p0 + p1

    # Mask the invalid last output column (only OW = Wh - 1 columns are valid)
    # so it pollutes neither the batch-norm statistics nor the output.
    col = lax.broadcasted_iota(jnp.int32, (tm, 1), 0) % wh
    conv = jnp.where(col < wh - 1, conv, 0.0)

    # Accumulate stats straight into the (resident) per-core output block.
    stats_ref[0:1, :] += jnp.sum(conv, axis=0, keepdims=True)
    stats_ref[1:2, :] += jnp.sum(conv * conv, axis=0, keepdims=True)

    conv_ref[...] = conv.reshape(tile_r, wh, cp).astype(conv_ref.dtype)


# ----------------------------------------------------------------------------
# Pass 2: folded BN affine (one FMA) + LeakyReLU(0.2); bf16 in/out, aliased.
# ----------------------------------------------------------------------------
def _bn_lrelu_kernel(conv_ref, scale_ref, shift_ref, o_ref):
    y = conv_ref[...].astype(jnp.float32) * scale_ref[...] + shift_ref[...]
    o_ref[...] = jnp.where(y >= 0.0, y, NEG_SLOPE * y).astype(o_ref.dtype)


def cnn_block_forward_nhwc(x_nhwc, conv_w, gamma, beta, *, out_dtype=jnp.float32):
    """x_nhwc: (N, H, W, Cin); conv_w: (Cout, Cin, 4, 4); gamma/beta: (Cout,).

    Returns (N, OH, OW, Cout).  Chain CNNBlocks through this NHWC entry point
    to avoid paying NCHW<->NHWC transposes per block.
    """
    n, h, w, cin = x_nhwc.shape
    cout = conv_w.shape[0]
    assert h >= KH and w >= KW, "input smaller than the 4x4 kernel"
    hh, wh = h // 2, w // 2
    oh, ow = hh - 1, wh - 1
    x_nhwc = x_nhwc[:, :2 * hh, :2 * wh, :]       # crop odd trailing row/col (unused)

    c4 = 4 * cin
    c8 = 2 * c4
    cp = _round_up(cout, 128)                     # lane-dense output channels
    noh = n * oh
    m_true = n * oh * ow                          # element count per channel for BN

    # Space-to-depth: y[n, r, c, (dy, dx, ci)] = x[n, 2r+dy, 2c+dx, ci]   (bf16).
    y = x_nhwc.astype(jnp.bfloat16).reshape(n, hh, 2, wh, 2, cin)
    y = y.transpose(0, 1, 3, 2, 4, 5).reshape(n, hh, wh, c4)
    # Row-pair buffer: output row r uses y rows r and r+1.
    yr = jnp.concatenate(
        [y[:, :oh].reshape(noh, wh, c4), y[:, 1:].reshape(noh, wh, c4)], axis=-1)

    # Weights: the 4x4 stride-2 conv == 2x2 stride-1 conv on y.
    #   W2[ry, rx, (dy, dx, ci), co] = w[2ry+dy, 2rx+dx, ci, co]
    w_khwc = jnp.transpose(conv_w, (2, 3, 1, 0))                      # (4,4,Cin,Cout)
    w2 = w_khwc.reshape(2, 2, 2, 2, cin, cout).transpose(0, 2, 1, 3, 4, 5)
    w2 = w2.reshape(2, 2, c4, cout)                                   # (ry, rx, C4, Cout)
    # rx=0 / rx=1 operands; the K axis is (ry=0 block, ry=1 block) matching yr.
    w_all = jnp.stack(
        [jnp.concatenate([w2[0, 0], w2[1, 0]], axis=0),
         jnp.concatenate([w2[0, 1], w2[1, 1]], axis=0)], axis=0)      # (2, C8, Cout)
    if cp != cout:   # pad only the tiny weight; activations stay unpadded
        w_all = jnp.pad(w_all, ((0, 0), (0, 0), (0, cp - cout)))
    w_all = w_all.astype(jnp.bfloat16)

    # ---- Pass-1 tiling: grid (ncores, row_tiles); tiles divide rows exactly. ----
    ncores = 2 if (noh % 2 == 0 and noh >= 2) else 1    # v7x megacore split
    rows_per_core = noh // ncores
    # Keep the double-buffered input tile and the f32 conv transient ~<=2 MiB
    # each so realistic block sizes fit v5e's 16 MiB / v7x's 32 MiB scoped VMEM.
    limit_r = min((2 << 20) // (wh * c8 * 2),
                  (2 << 20) // (wh * cp * 4),
                  max(1, 4096 // wh))
    tile_r = _largest_divisor_leq(rows_per_core, max(1, limit_r))
    inner = rows_per_core // tile_r

    conv3, stats = pl.pallas_call(
        _conv_stats_kernel,
        out_shape=(jax.ShapeDtypeStruct((noh, wh, cp), jnp.bfloat16),
                   jax.ShapeDtypeStruct((ncores * 8, cp), jnp.float32)),
        grid=(ncores, inner),
        in_specs=[
            pl.BlockSpec((tile_r, wh, c8), lambda c, t: (c * inner + t, 0, 0)),
            pl.BlockSpec((2, c8, cp), lambda c, t: (0, 0, 0),
                         pipeline_mode=pl.Buffered(1)),
        ],
        out_specs=(
            pl.BlockSpec((tile_r, wh, cp), lambda c, t: (c * inner + t, 0, 0)),
            pl.BlockSpec((8, cp), lambda c, t: (c, 0)),
        ),
        compiler_params=pltpu.CompilerParams(
            dimension_semantics=("parallel", "arbitrary")),
    )(yr, w_all)

    # ---- Fold BN into a per-channel scale/shift (tiny, plain JAX). ----
    st = stats.reshape(ncores, 8, cp)
    ch_sum = jnp.sum(st[:, 0, :], axis=0)                  # (Cp,)
    ch_sq = jnp.sum(st[:, 1, :], axis=0)
    mean = ch_sum / float(m_true)
    # TODO(synk): E[x^2]-E[x]^2 in f32 can cancel when |mean| >> std; fine for
    # GAN discriminator activations, use a shifted sum-of-squares if reused.
    var = jnp.maximum(ch_sq / float(m_true) - mean * mean, 0.0)
    gamma_p = jnp.zeros((cp,), jnp.float32).at[:cout].set(gamma.astype(jnp.float32))
    beta_p = jnp.zeros((cp,), jnp.float32).at[:cout].set(beta.astype(jnp.float32))
    scale_v = gamma_p * lax.rsqrt(var + BN_EPS)
    shift_v = beta_p - mean * scale_v
    scale = scale_v.reshape(1, 1, cp)
    shift = shift_v.reshape(1, 1, cp)

    # ---- Pass 2: streaming BN affine + LeakyReLU, aliased onto the conv buffer. ----
    tile_r2 = _largest_divisor_leq(noh, max(1, (4 << 20) // (wh * cp * 2)))
    out3 = pl.pallas_call(
        _bn_lrelu_kernel,
        out_shape=jax.ShapeDtypeStruct((noh, wh, cp), jnp.bfloat16),
        grid=(noh // tile_r2,),
        in_specs=[pl.BlockSpec((tile_r2, wh, cp), lambda i: (i, 0, 0)),
                  pl.BlockSpec((1, 1, cp), lambda i: (0, 0, 0)),
                  pl.BlockSpec((1, 1, cp), lambda i: (0, 0, 0))],
        out_specs=pl.BlockSpec((tile_r2, wh, cp), lambda i: (i, 0, 0)),
        input_output_aliases={0: 0},
        compiler_params=pltpu.CompilerParams(
            dimension_semantics=("parallel",)),
    )(conv3, scale, shift)

    # Slice off the invalid last column and padded channels; cast at the boundary.
    out = out3[:, :ow, :cout].reshape(n, oh, ow, cout)
    return out.astype(out_dtype)


def cnn_block_forward(x_nchw, conv_w, gamma, beta):
    """NCHW boundary wrapper matching the PyTorch module (returns NCHW f32)."""
    x_nhwc = jnp.transpose(x_nchw, (0, 2, 3, 1))
    out = cnn_block_forward_nhwc(x_nhwc, conv_w, gamma, beta, out_dtype=jnp.float32)
    return jnp.transpose(out, (0, 3, 1, 2))


def _reference(x_nchw, conv_w, gamma, beta):
    """Pure-JAX f32 reference (XLA conv) matching the PyTorch module."""
    conv = lax.conv_general_dilated(
        x_nchw, conv_w, window_strides=(STRIDE, STRIDE), padding="VALID",
        dimension_numbers=("NCHW", "OIHW", "NCHW"))
    mean = jnp.mean(conv, axis=(0, 2, 3), keepdims=True)
    var = jnp.mean((conv - mean) ** 2, axis=(0, 2, 3), keepdims=True)
    y = (conv - mean) * lax.rsqrt(var + BN_EPS)
    y = y * gamma.reshape(1, -1, 1, 1) + beta.reshape(1, -1, 1, 1)
    return jnp.where(y >= 0, y, NEG_SLOPE * y)


if __name__ == "__main__":
    key = jax.random.PRNGKey(0)
    k_x, k_w, k_g, k_b = jax.random.split(key, 4)

    N, CIN, H, W = 2, 4, 16, 16
    COUT = 8

    x = jax.random.normal(k_x, (N, CIN, H, W), dtype=jnp.float32)
    conv_w = 0.1 * jax.random.normal(k_w, (COUT, CIN, KH, KW), dtype=jnp.float32)
    gamma = 1.0 + 0.1 * jax.random.normal(k_g, (COUT,), dtype=jnp.float32)
    beta = 0.1 * jax.random.normal(k_b, (COUT,), dtype=jnp.float32)

    fwd = jax.jit(cnn_block_forward)
    out = jax.block_until_ready(fwd(x, conv_w, gamma, beta))

    ref = jax.block_until_ready(_reference(x, conv_w, gamma, beta))
    assert out.shape == ref.shape == (N, COUT, (H - KH) // STRIDE + 1, (W - KW) // STRIDE + 1)
    # bf16 MXU operands + bf16 conv/activation storage -> compare with matching slack.
    err = float(jnp.max(jnp.abs(out - ref)))
    assert jnp.allclose(out, ref, atol=4e-2, rtol=4e-2), err

    print("KERNEL_OK")
</pallas_src>

<mosaic_0001>
module attributes {stable_mosaic.version = 11 : i64} {
  func.func @_conv_stats_kernel(%arg0: i32, %arg1: i32, %arg2: memref<7x8x32xbf16, #tpu.memory_space<vmem>>, %arg3: memref<2x32x128xbf16, #tpu.memory_space<vmem>>, %arg4: memref<7x8x128xbf16, #tpu.memory_space<vmem>>, %arg5: memref<8x128xf32, #tpu.memory_space<vmem>>) attributes {dimension_semantics = [#tpu.dimension_semantics<parallel>, #tpu.dimension_semantics<arbitrary>], iteration_bounds = array<i64: 2, 1>, scalar_prefetch = 0 : i64, scratch_operands = 0 : i64, tpu.core_type = #tpu.core_type<tc>, window_params = [{transform_indices = @transform_0, window_bounds = array<i64: 7, 8, 32>}, {pipeline_mode = #tpu.pipeline_mode<synchronous>, transform_indices = @transform_1, window_bounds = array<i64: 2, 32, 128>}, {transform_indices = @transform_2, window_bounds = array<i64: 7, 8, 128>}, {transform_indices = @transform_3, window_bounds = array<i64: 8, 128>}]} {
    %c0_i32 = arith.constant 0 : i32
    %0 = arith.cmpi eq, %arg1, %c0_i32 : i32
    %1 = arith.extui %0 : i1 to i32
    %c0_i32_0 = arith.constant 0 : i32
    %2 = arith.cmpi ne, %1, %c0_i32_0 : i32
    scf.if %2 {
      %cst_28 = arith.constant 0.000000e+00 : f32
      %52 = vector.broadcast %cst_28 : f32 to vector<8x128xf32>
      %c0_29 = arith.constant 0 : index
      %c0_30 = arith.constant 0 : index
      %53 = vector.load %arg5[%c0_29, %c0_30] : memref<8x128xf32, #tpu.memory_space<vmem>>, vector<8x128xf32>
      tpu.vector_store %arg5[%c0_29, %c0_30], %52 {strides = array<i32>} : memref<8x128xf32, #tpu.memory_space<vmem>>, vector<8x128xf32>,
    } else {
    }
    %c0 = arith.constant 0 : index
    %c0_1 = arith.constant 0 : index
    %c0_2 = arith.constant 0 : index
    %3 = vector.load %arg2[%c0, %c0_1, %c0_2] : memref<7x8x32xbf16, #tpu.memory_space<vmem>>, vector<7x8x32xbf16>
    %4 = vector.shape_cast %3 : vector<7x8x32xbf16> to vector<56x32xbf16>
    %c0_3 = arith.constant 0 : index
    %c0_4 = arith.constant 0 : index
    %c0_5 = arith.constant 0 : index
    %5 = vector.load %arg3[%c0_3, %c0_4, %c0_5] : memref<2x32x128xbf16, #tpu.memory_space<vmem>>, vector<1x32x128xbf16>
    %6 = vector.shape_cast %5 : vector<1x32x128xbf16> to vector<32x128xbf16>
    %cst = arith.constant dense<0.000000e+00> : vector<56x128xf32>
    %7 = tpu.matmul %4, %6, %cst {dimension_numbers = #tpu.dot_dimension_numbers<[1], [0], [0], [1], [0, 0, 1, 1], [], []>} : vector<56x32xbf16>, vector<32x128xbf16>, vector<56x128xf32> -> vector<56x128xf32>
    %c1 = arith.constant 1 : index
    %c0_6 = arith.constant 0 : index
    %c0_7 = arith.constant 0 : index
    %8 = vector.load %arg3[%c1, %c0_6, %c0_7] : memref<2x32x128xbf16, #tpu.memory_space<vmem>>, vector<1x32x128xbf16>
    %9 = vector.shape_cast %8 : vector<1x32x128xbf16> to vector<32x128xbf16>
    %cst_8 = arith.constant dense<0.000000e+00> : vector<56x128xf32>
    %10 = tpu.matmul %4, %9, %cst_8 {dimension_numbers = #tpu.dot_dimension_numbers<[1], [0], [0], [1], [0, 0, 1, 1], [], []>} : vector<56x32xbf16>, vector<32x128xbf16>, vector<56x128xf32> -> vector<56x128xf32>
    %11 = vector.extract_strided_slice %10 {offsets = [1, 0], sizes = [55, 128], strides = [1, 1]} : vector<56x128xf32> to vector<55x128xf32>
    %cst_9 = arith.constant 0.000000e+00 : f32
    %12 = vector.broadcast %cst_9 : f32 to vector<1x128xf32>
    %13 = tpu.concatenate %11, %12 in 0 : vector<55x128xf32>, vector<1x128xf32> -> vector<56x128xf32>
    %14 = arith.addf %7, %13 : vector<56x128xf32>
    %15 = tpu.iota {dimensions = array<i32: 0>} : vector<56x1xi32>
    %c8_i32 = arith.constant 8 : i32
    %c0_i32_10 = arith.constant 0 : i32
    %16 = arith.cmpi eq, %c8_i32, %c0_i32_10 : i32
    %c1_i32 = arith.constant 1 : i32
    %17 = arith.select %16, %c1_i32, %c8_i32 : i32
    %18 = vector.broadcast %17 : i32 to vector<56x1xi32>
    %19 = arith.remsi %15, %18 : vector<56x1xi32>
    %c0_i32_11 = arith.constant 0 : i32
    %20 = vector.broadcast %c0_i32_11 : i32 to vector<56x1xi32>
    %21 = arith.cmpi ne, %19, %20 : vector<56x1xi32>
    %c0_i32_12 = arith.constant 0 : i32
    %22 = vector.broadcast %c0_i32_12 : i32 to vector<56x1xi32>
    %23 = arith.cmpi slt, %19, %22 : vector<56x1xi32>
    %c0_i32_13 = arith.constant 0 : i32
    %24 = arith.cmpi slt, %17, %c0_i32_13 : i32
    %25 = vector.broadcast %24 : i1 to vector<56x1xi1>
    %26 = vector.broadcast %25 : vector<56x1xi1> to vector<56x1xi1>
    %27 = arith.xori %23, %26 : vector<56x1xi1>
    %28 = arith.andi %27, %21 : vector<56x1xi1>
    %29 = vector.broadcast %17 : i32 to vector<56x1xi32>
    %30 = arith.addi %19, %29 : vector<56x1xi32>
    %31 = arith.select %28, %30, %19 : vector<56x1xi1>, vector<56x1xi32>
    %c7_i32 = arith.constant 7 : i32
    %32 = vector.broadcast %c7_i32 : i32 to vector<56x1xi32>
    %33 = arith.cmpi slt, %31, %32 : vector<56x1xi32>
    %cst_14 = arith.constant 0.000000e+00 : f32
    %34 = vector.shape_cast %33 : vector<56x1xi1> to vector<56x1xi1>
    %35 = vector.broadcast %34 : vector<56x1xi1> to vector<56x128xi1>
    %36 = vector.broadcast %cst_14 : f32 to vector<56x128xf32>
    %37 = arith.select %35, %14, %36 : vector<56x128xi1>, vector<56x128xf32>
    %c0_15 = arith.constant 0 : index
    %c0_16 = arith.constant 0 : index
    %38 = vector.load %arg5[%c0_15, %c0_16] : memref<8x128xf32, #tpu.memory_space<vmem>>, vector<1x128xf32>
    %cst_17 = arith.constant dense<0.000000e+00> : vector<128xf32>
    %39 = vector.multi_reduction <add>, %37, %cst_17 [0] : vector<56x128xf32> to vector<128xf32>
    %40 = vector.shape_cast %39 : vector<128xf32> to vector<1x128xf32>
    %41 = arith.addf %38, %40 : vector<1x128xf32>
    %c0_18 = arith.constant 0 : index
    %c0_19 = arith.constant 0 : index
    %42 = vector.load %arg5[%c0_18, %c0_19] : memref<8x128xf32, #tpu.memory_space<vmem>>, vector<1x128xf32>
    tpu.vector_store %arg5[%c0_18, %c0_19], %41 {strides = array<i32>} : memref<8x128xf32, #tpu.memory_space<vmem>>, vector<1x128xf32>,
    %c1_20 = arith.constant 1 : index
    %c0_21 = arith.constant 0 : index
    %43 = vector.load %arg5[%c1_20, %c0_21] : memref<8x128xf32, #tpu.memory_space<vmem>>, vector<1x128xf32>
    %44 = arith.mulf %37, %37 : vector<56x128xf32>
    %cst_22 = arith.constant dense<0.000000e+00> : vector<128xf32>
    %45 = vector.multi_reduction <add>, %44, %cst_22 [0] : vector<56x128xf32> to vector<128xf32>
    %46 = vector.shape_cast %45 : vector<128xf32> to vector<1x128xf32>
    %47 = arith.addf %43, %46 : vector<1x128xf32>
    %c1_23 = arith.constant 1 : index
    %c0_24 = arith.constant 0 : index
    %48 = vector.load %arg5[%c1_23, %c0_24] : memref<8x128xf32, #tpu.memory_space<vmem>>, vector<1x128xf32>
    tpu.vector_store %arg5[%c1_23, %c0_24], %47 {strides = array<i32>} : memref<8x128xf32, #tpu.memory_space<vmem>>, vector<1x128xf32>,
    %49 = vector.shape_cast %37 : vector<56x128xf32> to vector<7x8x128xf32>
    %50 = arith.truncf %49 : vector<7x8x128xf32> to vector<7x8x128xbf16>
    %c0_25 = arith.constant 0 : index
    %c0_26 = arith.constant 0 : index
    %c0_27 = arith.constant 0 : index
    %51 = vector.load %arg4[%c0_25, %c0_26, %c0_27] : memref<7x8x128xbf16, #tpu.memory_space<vmem>>, vector<7x8x128xbf16>
    tpu.vector_store %arg4[%c0_25, %c0_26, %c0_27], %50 {strides = array<i32>} : memref<7x8x128xbf16, #tpu.memory_space<vmem>>, vector<7x8x128xbf16>,
    return
  }
  func.func @transform_0(%arg0: i32, %arg1: i32) -> (i32, i32, i32) {
    %c1_i32 = arith.constant 1 : i32
    %0 = arith.muli %arg0, %c1_i32 : i32
    %1 = arith.addi %0, %arg1 : i32
    %c0_i32 = arith.constant 0 : i32
    %c0_i32_0 = arith.constant 0 : i32
    %c0_i32_1 = arith.constant 0 : i32
    return %1, %c0_i32, %c0_i32_0 : i32, i32, i32
  }
  func.func @transform_1(%arg0: i32, %arg1: i32) -> (i32, i32, i32) {
    %c0_i32 = arith.constant 0 : i32
    %c0_i32_0 = arith.constant 0 : i32
    %c0_i32_1 = arith.constant 0 : i32
    %c0_i32_2 = arith.constant 0 : i32
    return %c0_i32, %c0_i32_0, %c0_i32_1 : i32, i32, i32
  }
  func.func @transform_2(%arg0: i32, %arg1: i32) -> (i32, i32, i32) {
    %c1_i32 = arith.constant 1 : i32
    %0 = arith.muli %arg0, %c1_i32 : i32
    %1 = arith.addi %0, %arg1 : i32
    %c0_i32 = arith.constant 0 : i32
    %c0_i32_0 = arith.constant 0 : i32
    %c0_i32_1 = arith.constant 0 : i32
    return %1, %c0_i32, %c0_i32_0 : i32, i32, i32
  }
  func.func @transform_3(%arg0: i32, %arg1: i32) -> (i32, i32) {
    %c0_i32 = arith.constant 0 : i32
    %c0_i32_0 = arith.constant 0 : i32
    return %arg0, %c0_i32 : i32, i32
  }
}

module attributes {stable_mosaic.version = 11 : i64} {
  func.func @_bn_lrelu_kernel(%arg0: i32, %arg1: memref<14x8x128xbf16, #tpu.memory_space<vmem>>, %arg2: memref<1x1x128xf32, #tpu.memory_space<vmem>>, %arg3: memref<1x1x128xf32, #tpu.memory_space<vmem>>, %arg4: memref<14x8x128xbf16, #tpu.memory_space<vmem>>) attributes {dimension_semantics = [#tpu.dimension_semantics<parallel>], iteration_bounds = array<i64: 1>, scalar_prefetch = 0 : i64, scratch_operands = 0 : i64, tpu.core_type = #tpu.core_type<tc>, window_params = [{transform_indices = @transform_0, window_bounds = array<i64: 14, 8, 128>}, {pipeline_mode = #tpu.pipeline_mode<synchronous>, transform_indices = @transform_1, window_bounds = array<i64: 1, 1, 128>}, {pipeline_mode = #tpu.pipeline_mode<synchronous>, transform_indices = @transform_2, window_bounds = array<i64: 1, 1, 128>}, {transform_indices = @transform_3, window_bounds = array<i64: 14, 8, 128>}]} {
    %c0 = arith.constant 0 : index
    %c0_0 = arith.constant 0 : index
    %c0_1 = arith.constant 0 : index
    %0 = vector.load %arg1[%c0, %c0_0, %c0_1] : memref<14x8x128xbf16, #tpu.memory_space<vmem>>, vector<14x8x128xbf16>
    %1 = arith.extf %0 : vector<14x8x128xbf16> to vector<14x8x128xf32>
    %c0_2 = arith.constant 0 : index
    %c0_3 = arith.constant 0 : index
    %c0_4 = arith.constant 0 : index
    %2 = vector.load %arg2[%c0_2, %c0_3, %c0_4] : memref<1x1x128xf32, #tpu.memory_space<vmem>>, vector<1x1x128xf32>
    %3 = vector.broadcast %2 : vector<1x1x128xf32> to vector<14x8x128xf32>
    %4 = arith.mulf %1, %3 : vector<14x8x128xf32>
    %c0_5 = arith.constant 0 : index
    %c0_6 = arith.constant 0 : index
    %c0_7 = arith.constant 0 : index
    %5 = vector.load %arg3[%c0_5, %c0_6, %c0_7] : memref<1x1x128xf32, #tpu.memory_space<vmem>>, vector<1x1x128xf32>
    %6 = vector.broadcast %5 : vector<1x1x128xf32> to vector<14x8x128xf32>
    %7 = arith.addf %4, %6 : vector<14x8x128xf32>
    %cst = arith.constant 0.000000e+00 : f32
    %8 = vector.broadcast %cst : f32 to vector<14x8x128xf32>
    %9 = arith.cmpf oge, %7, %8 : vector<14x8x128xf32>
    %cst_8 = arith.constant 2.000000e-01 : f32
    %10 = vector.broadcast %cst_8 : f32 to vector<14x8x128xf32>
    %11 = arith.mulf %10, %7 : vector<14x8x128xf32>
    %12 = arith.select %9, %7, %11 : vector<14x8x128xi1>, vector<14x8x128xf32>
    %13 = arith.truncf %12 : vector<14x8x128xf32> to vector<14x8x128xbf16>
    %c0_9 = arith.constant 0 : index
    %c0_10 = arith.constant 0 : index
    %c0_11 = arith.constant 0 : index
    %14 = vector.load %arg4[%c0_9, %c0_10, %c0_11] : memref<14x8x128xbf16, #tpu.memory_space<vmem>>, vector<14x8x128xbf16>
    tpu.vector_store %arg4[%c0_9, %c0_10, %c0_11], %13 {strides = array<i32>} : memref<14x8x128xbf16, #tpu.memory_space<vmem>>, vector<14x8x128xbf16>,
    return
  }
  func.func @transform_0(%arg0: i32) -> (i32, i32, i32) {
    %c0_i32 = arith.constant 0 : i32
    %c0_i32_0 = arith.constant 0 : i32
    %c0_i32_1 = arith.constant 0 : i32
    return %arg0, %c0_i32, %c0_i32_0 : i32, i32, i32
  }
  func.func @transform_1(%arg0: i32) -> (i32, i32, i32) {
    %c0_i32 = arith.constant 0 : i32
    %c0_i32_0 = arith.constant 0 : i32
    %c0_i32_1 = arith.constant 0 : i32
    %c0_i32_2 = arith.constant 0 : i32
    return %c0_i32, %c0_i32_0, %c0_i32_1 : i32, i32, i32
  }
  func.func @transform_2(%arg0: i32) -> (i32, i32, i32) {
    %c0_i32 = arith.constant 0 : i32
    %c0_i32_0 = arith.constant 0 : i32
    %c0_i32_1 = arith.constant 0 : i32
    %c0_i32_2 = arith.constant 0 : i32
    return %c0_i32, %c0_i32_0, %c0_i32_1 : i32, i32, i32
  }
  func.func @transform_3(%arg0: i32) -> (i32, i32, i32) {
    %c0_i32 = arith.constant 0 : i32
    %c0_i32_0 = arith.constant 0 : i32
    %c0_i32_1 = arith.constant 0 : i32
    return %arg0, %c0_i32, %c0_i32_0 : i32, i32, i32
  }
}

</mosaic_0001>

<bundles_post_ra>
// kernel: cnn_block_forward.3
= control target key start
LH: loop header
LB: loop body
LE: loop exit
PB: predicated region body
PF: predicated region fallthrough
CT: control target
= control target key end

     0   :  { %s336_s0 = inlined_call_operand.vmem [shape: bf16[14,8,128], index: 0, kind: input, shape index: {}, may-alias: {0,3}]   ;;  %s337_s1 = inlined_call_operand.vmem [shape: f32[1,1,128], index: 1, kind: input, shape index: {}]   ;;  %s338_s2 = inlined_call_operand.vmem [shape: f32[1,1,128], index: 2, kind: input, shape index: {}]   ;;  %s339_s3 = inlined_call_operand.vmem [shape: bf16[14,8,128], index: 3, kind: output, shape index: {}, may-alias: {0,3}]  }
   0x1   :  { %v161_v0 = vld [vmem:[%s336_s0] sm:$0xff]   ;;  %v223_v4 = vld [vmem:[%s336_s0 + $0x8] sm:$0xff]   ;;  %v224_v5 = vld [vmem:[%s336_s0 + $0x10] sm:$0xff]  }
   0x2   :  { %v261_v1 = vld [vmem:[%s337_s1] ss:$0 sm:$0xff]  ;;  %v162_v2 = vunpack.c.l.bf16 %v161_v0  ;;  %v163_v3 = vunpack.c.h.bf16 %v161_v0  ;;  %v225_v6 = vld [vmem:[%s336_s0 + $0x18] sm:$0xff]   ;;  %v166_v8 = vunpack.c.l.bf16 %v223_v4  ;;  %v167_v9 = vunpack.c.h.bf16 %v223_v4  ;;  %v227_v35 = vld [vmem:[%s336_s0 + $0x28] sm:$0xff]  }
   0x3   :  { %v275_v7 = vld [vmem:[%s338_s2] ss:$0 sm:$0xff]  ;;  %v170_v10 = vunpack.c.l.bf16 %v224_v5  ;;  %v171_v11 = vunpack.c.h.bf16 %v224_v5  ;;  %v174_v14 = vunpack.c.l.bf16 %v225_v6  ;;  %v175_v15 = vunpack.c.h.bf16 %v225_v6 }
   0x4   :  { %v49_v12 = vmul.f32 %v162_v2, %v261_v1  ;;  %v50_v13 = vmul.f32 %v163_v3, %v261_v1  ;;  %v51_v16 = vmul.f32 %v166_v8, %v261_v1  ;;  %v52_v17 = vmul.f32 %v167_v9, %v261_v1  ;;  %v226_v34 = vld [vmem:[%s336_s0 + $0x20] sm:$0xff]  }
   0x5   :  { %v53_v18 = vmul.f32 %v170_v10, %v261_v1  ;;  %v54_v19 = vmul.f32 %v171_v11, %v261_v1  ;;  %v55_v22 = vmul.f32 %v174_v14, %v261_v1  ;;  %v56_v23 = vmul.f32 %v175_v15, %v261_v1 }
   0x6   :  { %v70_v20 = vadd.f32 %v275_v7, %v49_v12  ;;  %v71_v21 = vadd.f32 %v275_v7, %v50_v13  ;;  %v72_v24 = vadd.f32 %v275_v7, %v51_v16  ;;  %v73_v25 = vadd.f32 %v275_v7, %v52_v17 }
   0x7   :  { %v74_v26 = vadd.f32 %v275_v7, %v53_v18  ;;  %v75_v27 = vadd.f32 %v275_v7, %v54_v19  ;;  %v76_v42 = vadd.f32 %v275_v7, %v55_v22  ;;  %v77_v43 = vadd.f32 %v275_v7, %v56_v23 }
   0x8   :  { %vm84_vm0 = vcmp.ge.f32.partialorder %v70_v20, 0.0  ;;  %vm85_vm1 = vcmp.ge.f32.partialorder %v71_v21, 0.0  ;;  %v98_v28 = vmul.f32 0.2, %v70_v20  ;;  %v99_v29 = vmul.f32 0.2, %v71_v21 }
   0x9   :  { %vm86_vm2 = vcmp.ge.f32.partialorder %v72_v24, 0.0  ;;  %vm87_vm3 = vcmp.ge.f32.partialorder %v73_v25, 0.0  ;;  %v100_v30 = vmul.f32 0.2, %v72_v24  ;;  %v101_v31 = vmul.f32 0.2, %v73_v25 }
   0xa   :  { %v112_v32 = vsel %vm84_vm0, %v70_v20, %v98_v28  ;;  %v113_v33 = vsel %vm85_vm1, %v71_v21, %v99_v29  ;;  %vm88_vm4 = vcmp.ge.f32.partialorder %v74_v26, 0.0  ;;  %vm89_vm5 = vcmp.ge.f32.partialorder %v75_v27, 0.0 }
   0xb   :  { %v191_v36 = vpack.c.bf16 %v113_v33, %v112_v32  ;;  %v114_v37 = vsel %vm86_vm2, %v72_v24, %v100_v30  ;;  %v115_v38 = vsel %vm87_vm3, %v73_v25, %v101_v31  ;;  %v102_v39 = vmul.f32 0.2, %v74_v26 }
   0xc   :  { %v196_v40 = vpack.c.bf16 %v115_v38, %v114_v37  ;;  %v103_v41 = vmul.f32 0.2, %v75_v27  ;;  %v178_v45 = vunpack.c.l.bf16 %v226_v34  ;;  %v179_v46 = vunpack.c.h.bf16 %v226_v34 }
   0xd   :  { %192 = vst [vmem:[%s339_s3] sm:$0xff] %v191_v36   ;;  %v116_v44 = vsel %vm88_vm4, %v74_v26, %v102_v39  ;;  %v182_v47 = vunpack.c.l.bf16 %v227_v35  ;;  %vm90_vm6 = vcmp.ge.f32.partialorder %v76_v42, 0.0  ;;  %vm91_vm7 = vcmp.ge.f32.partialorder %v77_v43, 0.0 }
   0xe   :  { %v117_v49 = vsel %vm89_vm5, %v75_v27, %v103_v41  ;;  %v104_v50 = vmul.f32 0.2, %v76_v42  ;;  %v105_v52 = vmul.f32 0.2, %v77_v43  ;;  %v57_v53 = vmul.f32 %v178_v45, %v261_v1 }
   0xf   :  { %v201_v51 = vpack.c.bf16 %v117_v49, %v116_v44  ;;  %v58_v54 = vmul.f32 %v179_v46, %v261_v1  ;;  %v183_v56 = vunpack.c.h.bf16 %v227_v35  ;;  %v59_v57 = vmul.f32 %v182_v47, %v261_v1 }
  0x10   :  { %v118_v55 = vsel %vm90_vm6, %v76_v42, %v104_v50  ;;  %v119_v59 = vsel %vm91_vm7, %v77_v43, %v105_v52  ;;  %v78_v60 = vadd.f32 %v275_v7, %v57_v53 }
  0x11   :  { %v79_v61 = vadd.f32 %v275_v7, %v58_v54  ;;  %v206_v63 = vpack.c.bf16 %v119_v59, %v118_v55  ;;  %v60_v0 = vmul.f32 %v183_v56, %v261_v1  ;;  %v80_v2 = vadd.f32 %v275_v7, %v59_v57 }
  0x12   :  { %vm92_vm8 = vcmp.ge.f32.partialorder %v78_v60, 0.0  ;;  %v106_v4 = vmul.f32 0.2, %v78_v60 }
  0x13   :  { %vm93_vm9 = vcmp.ge.f32.partialorder %v79_v61, 0.0  ;;  %v107_v5 = vmul.f32 0.2, %v79_v61  ;;  %v81_v6 = vadd.f32 %v275_v7, %v60_v0  ;;  %vm94_vm10 = vcmp.ge.f32.partialorder %v80_v2, 0.0 }
  0x14   :  { %v228_v48 = vld [vmem:[%s336_s0 + $0x30] sm:$0xff]   ;;  %v108_v8 = vmul.f32 0.2, %v80_v2  ;;  %v120_v10 = vsel %vm92_vm8, %v78_v60, %v106_v4 }
  0x15   :  { %229 = vst [vmem:[%s339_s3 + $0x8] sm:$0xff] %v196_v40   ;;  %v186_v58 = vunpack.c.l.bf16 %v228_v48  ;;  %230 = vst [vmem:[%s339_s3 + $0x10] sm:$0xff] %v201_v51   ;;  %v187_v62 = vunpack.c.h.bf16 %v228_v48  ;;  %v121_v11 = vsel %vm93_vm9, %v79_v61, %v107_v5  ;;  %vm95_vm11 = vcmp.ge.f32.partialorder %v81_v6, 0.0 }
  0x16   :  { %231 = vst [vmem:[%s339_s3 + $0x18] sm:$0xff] %v206_v63   ;;  %v211_v13 = vpack.c.bf16 %v121_v11, %v120_v10  ;;  %v109_v14 = vmul.f32 0.2, %v81_v6  ;;  %v122_v15 = vsel %vm94_vm10, %v80_v2, %v108_v8 }
  0x17   :  { %v61_v3 = vmul.f32 %v186_v58, %v261_v1  ;;  %v62_v9 = vmul.f32 %v187_v62, %v261_v1 }
  0x18   :  { %232 = vst [vmem:[%s339_s3 + $0x20] sm:$0xff] %v211_v13   ;;  %v123_v18 = vsel %vm95_vm11, %v81_v6, %v109_v14 }
  0x19   :  { %v82_v12 = vadd.f32 %v275_v7, %v61_v3  ;;  %v83_v16 = vadd.f32 %v275_v7, %v62_v9  ;;  %v216_v19 = vpack.c.bf16 %v123_v18, %v122_v15 }
  0x1b   :  { %vm96_vm12 = vcmp.ge.f32.partialorder %v82_v12, 0.0  ;;  %v110_v17 = vmul.f32 0.2, %v82_v12  ;;  %vm97_vm13 = vcmp.ge.f32.partialorder %v83_v16, 0.0  ;;  %v111_v1 = vmul.f32 0.2, %v83_v16 }
  0x1c   :  { %233 = vst [vmem:[%s339_s3 + $0x28] sm:$0xff] %v216_v19  }
  0x1d   :  { %v124_v20 = vsel %vm96_vm12, %v82_v12, %v110_v17  ;;  %v125_v21 = vsel %vm97_vm13, %v83_v16, %v111_v1 }
  0x1e   :  { %v221_v22 = vpack.c.bf16 %v125_v21, %v124_v20 }
  0x20   :  { %234 = vst [vmem:[%s339_s3 + $0x30] sm:$0xff] %v221_v22  }

// kernel: cnn_block_forward.2
= control target key start
LH: loop header
LB: loop body
LE: loop exit
PB: predicated region body
PF: predicated region fallthrough
CT: control target
= control target key end

     0   :  { %s874_s12 = smov 0   ;;  %s876_s13 = smov 0   ;;  %s972_s0 = inlined_call_operand.vmem [shape: bf16[14,8,32], index: 0, kind: input, shape index: {}]   ;;  %s973_s1 = inlined_call_operand.vmem [shape: bf16[2,32,128], index: 1, kind: input, shape index: {}]   ;;  %s974_s2 = inlined_call_operand.vmem [shape: bf16[14,8,128], index: 2, kind: output, shape index: {0}]   ;;  %s975_s3 = inlined_call_operand.vmem [shape: f32[16,128], index: 3, kind: output, shape index: {1}]  }
   0x1   :  { %s878_s14 = smov 0  }
   0x2 LB: > { %s26_s15 = sadd.s32 1, %s847_s13  ;;  %p717_p0 = scmp.ge.s32.totalorder %s851_s14, 1  ;;  %s851_s14 = sphi %s878_s14, %s14_s14   ;;  %s847_s13 = sphi %s876_s13, %s983_s13   ;;  %s843_s12 = sphi %s874_s12, %s982_s12  }
   0x3   : > { %p28_p1 = scmp.ge.s32.totalorder %s26_s15, 2  ;;  %p159_p2 = scmp.lt.s32.totalorder %s851_s14, 3 }
   0x5   : > { %s985_s15 = smov (%p28_p1, %s26_s15), 0  ;;  %p160_p3 = pnand %p717_p0, %p159_p2 }
   0x6   : > { %s190_s18 = smul.u32 (!%p160_p3), 7, %s843_s12  ;;  %p205_p5 = scmp.lt.s32.totalorder (!%p160_p3), %s843_s12, 1 }
   0x7   : > { %163 = sbr.rel (%p160_p3) target bundleno = 258 (0x102), region = 28 }
   0x8   : > { %p191_p4 = scmp.lt.s32.totalorder (!%p160_p3), %s190_s18, 13 }
   0xc   : > { %v821_v0 = vld [vmem:[%s973_s1 + $0x18] sm:$0xff]   ;;  %v822_v1 = vld [vmem:[%s973_s1 + $0x8] sm:$0xff]   ;;  %v823_v2 = vld [vmem:[%s973_s1 + $0x10] sm:$0xff]   ;;  %s987_s18 = smov (!%p191_p4, %s190_s18), 13  ;;  %vm261_vm0 = vcmask 261120   ;;  %s989_s12 = smov (!%p205_p5, %s843_s12), 1  ;;  %v443_v9 = vlaneseq }
   0xd   : > { %772 = vmatprep.subr.bf16.mxu0 %v821_v0  ;;  %784 = vmatprep.subr.bf16.mxu1 %v822_v1  ;;  %v824_v3 = vld [vmem:[%s973_s1] sm:$0xff]   ;;  %s718_s25 = sshll.u32 %s987_s18, 2  ;;  %s720_s29 = sshll.u32 %s989_s12, 3  ;;  %v853_v8 = vmov 0.0   ;;  %vm345_vm1 = vcmask 1046528  }
   0xe   : > { %773 = vmatpush3.bf16.msra.mxu0 %v821_v0  ;;  %785 = vmatpush3.bf16.msra.mxu1 %v822_v1  ;;  %s194_s28 = scalar_lea.vmem %s972_s0, %s718_s25  ;;  %s920_s5 = scalar_lea.vmem %s975_s3, %s720_s29  ;;  %v444_v10 = vshrl.u32 %v443_v9, 7 }
   0xf   : > { %774 = vmatprep.subr.bf16.mxu0 %v823_v2  ;;  %786 = vmatprep.subr.bf16.mxu1 %v824_v3  ;;  %v825_v4 = vld [vmem:[%s194_s28] sm:$0xff]   ;;  %v826_v5 = vld [vmem:[%s194_s28 + $0x8] sm:$0xff]   ;;  %v827_v6 = vld [vmem:[%s194_s28 + $0x10] sm:$0xff]   ;;  %214 = vst [vmem:[%s920_s5] sm:$0xff] %v853_v8  ;;  %s946_s8 = scalar_lea.vmem %s974_s2, %s718_s25 }
  0x10   : > { %776 = vmatprep.mubr.msk.bf16.mxu0 %vm261_vm0, %v825_v4  ;;  %788 = vmatprep.mubr.msk.bf16.mxu1 %vm261_vm0, %v825_v4  ;;  %v828_v7 = vld [vmem:[%s194_s28 + $0x18] ss:$0 sps:$4 sm:$0xff]   ;;  %v446_v13 = vadd.s32 16, %v444_v10  ;;  %v445_v14 = vadd.s32 8, %v444_v10  ;;  %v450_v17 = vadd.s32 48, %v444_v10  ;;  %v455_v21 = vand.u32 7, %v444_v10 }
  0x11   : > { %v447_v28 = vadd.s32 24, %v444_v10  ;;  %v448_v29 = vadd.s32 32, %v444_v10  ;;  %v449_v33 = vadd.s32 40, %v444_v10 }
  0x12   : > { %775 = vmatpush3.bf16.msra.mxu0 %v823_v2  ;;  %787 = vmatpush3.bf16.msra.mxu1 %v824_v3  ;;  %v469_v19 = vand.u32 7, %v446_v13  ;;  %v462_v24 = vand.u32 7, %v445_v14  ;;  %v497_v27 = vand.u32 7, %v450_v17  ;;  %vm928_vm3 = vcmp.lt.s32.totalorder %v455_v21, 7 }
  0x13   : > { %v476_v46 = vand.u32 7, %v447_v28  ;;  %v483_v50 = vand.u32 7, %v448_v29  ;;  %v490_v51 = vand.u32 7, %v449_v33 }
  0x14   : > { %vm924_vm2 = vcmp.lt.s32.totalorder %v469_v19, 7  ;;  %vm536_vm4 = vcmp.lt.s32.totalorder %v462_v24, 7  ;;  %vm934_vm5 = vcmp.lt.s32.totalorder %v497_v27, 7 }
  0x15   : > { %777 = vmatmul.mubr.msk.bf16.vlgmr.msra.gmra.mxu0 %vm261_vm0, %v826_v5  ;;  %789 = vmatmul.mubr.msk.bf16.vlgmr.msra.gmra.mxu1 %vm261_vm0, %v826_v5  ;;  %vm538_vm6 = vcmp.lt.s32.totalorder %v476_v46, 7  ;;  %vm539_vm7 = vcmp.lt.s32.totalorder %v483_v50, 7  ;;  %vm540_vm8 = vcmp.lt.s32.totalorder %v490_v51, 7 }
  0x16   : > { %780 = vmatprep.mubr.msk.bf16.mxu0 %vm261_vm0, %v827_v6  ;;  %792 = vmatprep.mubr.msk.bf16.mxu1 %vm261_vm0, %v827_v6 }
  0x1d   : > { %781 = vmatmul.mubr.msk.bf16.gmra.mxu0 %vm261_vm0, %v828_v7  ;;  %793 = vmatmul.mubr.msk.bf16.gmra.mxu1 %vm261_vm0, %v828_v7 }
  0xd5   : > { %v778_v11 = vpop.f32.mrf.mxu0  ;;  %v790_v12 = vpop.f32.mrf.mxu1 }
  0xd6   : > { %v349_v22 = vrot.slane %v778_v11, 1 }
  0xd7   : > { %v308_v15 = vpop.f32.mrf.mxu0  ;;  %v413_v16 = vpop.f32.mrf.mxu1 }
  0xd8   : > { %v346_v30 = vrot.slane %v308_v15, 1 }
  0xd9   : > { %v779_v18 = vpop.f32.mrf.mxu0  ;;  %v791_v20 = vpop.f32.mrf.mxu1 }
  0xda   : > { %v351_v23 = vrot.slane %v779_v18, 1 }
  0xdb   : > { %v311_v25 = vpop.f32.mrf.mxu0  ;;  %v416_v26 = vpop.f32.mrf.mxu1 }
  0xdc   : > { %v352_v31 = vsel %vm345_vm1, %v349_v22, %v351_v23  ;;  %v347_v32 = vrot.slane %v311_v25, 1 }
  0xdd   : > { %v422_v34 = vadd.f32 %v790_v12, %v352_v31  ;;  %v782_v37 = vpop.f32.mrf.mxu0  ;;  %v794_v38 = vpop.f32.mrf.mxu1 }
  0xde   : > { %v348_v39 = vsel %vm345_vm1, %v346_v30, %v347_v32  ;;  %v350_v40 = vsel %vm345_vm1, %v347_v32, %v349_v22  ;;  %v357_v41 = vrot.slane %v782_v37, 1 }
  0xdf   : > { %v414_v42 = vadd.f32 %v413_v16, %v348_v39  ;;  %v417_v43 = vadd.f32 %v416_v26, %v350_v40  ;;  %v324_v45 = vpop.f32.mrf.mxu0  ;;  %v429_v47 = vpop.f32.mrf.mxu1  ;;  %v558_v52 = vsel %vm924_vm2, %v422_v34, 0.0  ;;  %v563_v39 = vld [vmem:[%s920_s5] sm:$0x1] }
  0xe0   : > { %v366_v48 = vsel %vm345_vm1, %v357_v41, 0.0  ;;  %v353_v49 = vrot.slane %v324_v45, 1  ;;  %v581_v3 = vmul.f32 %v558_v52, %v558_v52 }
  0xe1   : > { %v556_v53 = vsel %vm928_vm3, %v414_v42, 0.0  ;;  %v557_v54 = vsel %vm536_vm4, %v417_v43, 0.0  ;;  %v438_v55 = vadd.f32 %v794_v38, %v366_v48  ;;  %v783_v56 = vpop.f32.mrf.mxu0  ;;  %v795_v57 = vpop.f32.mrf.mxu1  ;;  %v578_v42 = vld [vmem:[%s920_s5 + $0x1] sm:$0x1] }
  0xe2   : > { %v564_v58 = vadd.f32 %v557_v54, %v556_v53  ;;  %v579_v59 = vmul.f32 %v556_v53, %v556_v53  ;;  %v580_v60 = vmul.f32 %v557_v54, %v557_v54  ;;  %v746_v61 = vpack.c.bf16 %v557_v54, %v556_v53 }
  0xe3   : > { %v562_v62 = vsel %vm934_vm5, %v438_v55, 0.0  ;;  %v354_v63 = vsel %vm345_vm1, %v351_v23, %v353_v49  ;;  %v327_v0 = vpop.f32.mrf.mxu0  ;;  %v432_v11 = vpop.f32.mrf.mxu1 }
  0xe4   : > { %v586_v1 = vadd.f32 %v580_v60, %v579_v59  ;;  %747 = vst [vmem:[%s946_s8] sm:$0xff] %v746_v61   ;;  %v606_v2 = vpack.c.bf16 %v562_v62, %v562_v62  ;;  %v565_v4 = vadd.f32 %v564_v58, %v558_v52  ;;  %v425_v5 = vadd.f32 %v791_v20, %v354_v63 }
  0xe5   : > { %v355_v6 = vrot.slane %v327_v0, 1  ;;  %v585_v26 = vmul.f32 %v562_v62, %v562_v62 }
  0xe6   : > { %613 = vst [vmem:[%s946_s8 + $0x18] sm:$0xf] %v606_v2  ;;  %v587_v7 = vadd.f32 %v586_v1, %v581_v3  ;;  %v559_v8 = vsel %vm538_vm6, %v425_v5, 0.0 }
  0xe7   : > { %v356_v9 = vsel %vm345_vm1, %v353_v49, %v355_v6  ;;  %v358_v10 = vsel %vm345_vm1, %v355_v6, %v357_v41  ;;  %v582_v12 = vmul.f32 %v559_v8, %v559_v8  ;;  %v751_v13 = vpack.c.bf16 %v559_v8, %v558_v52 }
  0xe8   : > { %v430_v14 = vadd.f32 %v429_v47, %v356_v9  ;;  %v433_v15 = vadd.f32 %v432_v11, %v358_v10  ;;  %v566_v16 = vadd.f32 %v565_v4, %v559_v8 }
  0xe9   : > { %758 = vst [vmem:[%s946_s8 + $0x8] sm:$0xff] %v751_v13   ;;  %v588_v21 = vadd.f32 %v587_v7, %v582_v12 }
  0xea   : > { %v560_v17 = vsel %vm539_vm7, %v430_v14, 0.0  ;;  %v561_v18 = vsel %vm540_vm8, %v433_v15, 0.0 }
  0xeb   : > { %v567_v19 = vadd.f32 %v566_v16, %v560_v17  ;;  %v583_v20 = vmul.f32 %v560_v17, %v560_v17  ;;  %v756_v22 = vpack.c.bf16 %v561_v18, %v560_v17  ;;  %v584_v24 = vmul.f32 %v561_v18, %v561_v18 }
  0xed   : > { %v568_v23 = vadd.f32 %v567_v19, %v561_v18  ;;  %v589_v25 = vadd.f32 %v588_v21, %v583_v20  ;;  %759 = vst [vmem:[%s946_s8 + $0x10] sm:$0xff] %v756_v22  }
  0xef   : > { %v569_v27 = vadd.f32 %v568_v23, %v562_v62  ;;  %v590_v28 = vadd.f32 %v589_v25, %v584_v24 }
  0xf1   : > { %v570_v29 = vrot.slane %v569_v27, 4  ;;  %v591_v30 = vadd.f32 %v590_v28, %v585_v26 }
  0xf3   : > { %v571_v31 = vadd.f32 %v570_v29, %v569_v27  ;;  %v592_v32 = vrot.slane %v591_v30, 4 }
  0xf5   : > { %v572_v33 = vrot.slane %v571_v31, 2  ;;  %v593_v34 = vadd.f32 %v592_v32, %v591_v30 }
  0xf7   : > { %v573_v35 = vadd.f32 %v572_v33, %v571_v31  ;;  %v594_v36 = vrot.slane %v593_v34, 2 }
  0xf9   : > { %v574_v37 = vrot.slane %v573_v35, 1  ;;  %v595_v38 = vadd.f32 %v594_v36, %v593_v34 }
  0xfb   : > { %v575_v40 = vadd.f32 %v574_v37, %v573_v35  ;;  %v596_v41 = vrot.slane %v595_v38, 1 }
  0xfd   : > { %v576_v43 = vadd.f32 %v575_v40, %v563_v39  ;;  %v597_v44 = vadd.f32 %v596_v41, %v595_v38 }
  0xff   : > { %577 = vst [vmem:[%s920_s5] sm:$0x1] %v576_v43  ;;  %v598_v45 = vadd.f32 %v597_v44, %v578_v42 }
 0x101   : > { %599 = vst [vmem:[%s920_s5 + $0x1] sm:$0x1] %v598_v45 }
 0x102 PF: > { %s14_s14 = sadd.s32 1, %s851_s14   ;;  %s982_s12 = smov %s847_s13 }
 0x103   : > { %p11_p6 = scmp.ge.s32.totalorder %s14_s14, 4   ;;  %s983_s13 = smov %s985_s15 }
 0x105   :  { %13 = sbr.rel (!%p11_p6) target bundleno = 2 (0x2), region = 75 }

</bundles_post_ra>
